<compile_context>
chip_gen: v6e
topology: v6e:2x2x1
jax: 0.10.0
libtpu: 0.0.40
codegen_flags: <defaults>
</compile_context>

<pallas_src>
import functools

import jax
import jax.numpy as jnp
from jax import lax
from jax.experimental import pallas as pl
from jax.experimental.pallas import tpu as pltpu


def _scorer_kernel(r_ref, q_ref, t_ref, w1_ref, b1_ref, w2_ref, b2_ref,
                   out_ref):
    # Natural-layout activation tiles, in their storage dtype.
    r = r_ref[...]                                           # (TM, H)
    q = q_ref[...]                                           # (TM, H)
    t = t_ref[...]                                           # (TM, H)

    mm_dtype = w1_ref.dtype
    # q * t in f32 on the VPU (cheap; the folded W1 already absorbed q - t).
    p = q.astype(jnp.float32) * t.astype(jnp.float32)        # (TM, H) f32

    # Layer 1: four K=H partial dots with f32 accumulation -- no (TM, 4H)
    # "feats" tensor is ever materialized.
    acc = jnp.dot(r.astype(mm_dtype), w1_ref[0],
                  preferred_element_type=jnp.float32)        # (TM, H) f32
    acc += jnp.dot(q.astype(mm_dtype), w1_ref[1],
                   preferred_element_type=jnp.float32)
    acc += jnp.dot(t.astype(mm_dtype), w1_ref[2],
                   preferred_element_type=jnp.float32)
    acc += jnp.dot(p.astype(mm_dtype), w1_ref[3],
                   preferred_element_type=jnp.float32)
    h = jnp.tanh(acc + b1_ref[...])                          # (TM, H) f32

    # Layer 2: contract the last dims (attention-style A @ B^T on the MXU) so
    # the logits come out lane-dense; row 0 of the (8, TM) result is stored as
    # a (1, TM) block.  b2 is a scalar living in SMEM.
    out8 = lax.dot_general(w2_ref[...], h.astype(mm_dtype),
                           dimension_numbers=(((1,), (1,)), ((), ())),
                           preferred_element_type=jnp.float32)   # (8, TM)
    out_ref[...] = (out8[0:1, :] + b2_ref[0]).astype(out_ref.dtype)


@functools.partial(jax.jit,
                   static_argnames=("row_tile", "matmul_dtype",
                                    "activation_dtype"))
def heuristic_mlp_scorer(rule_option, query_context, tree_state,
                         w1, b1, w2, b2, *,
                         row_tile=2048, matmul_dtype=None,
                         activation_dtype=None):
    """rule_option / query_context / tree_state: (B, N, H)  (context_sz == H,
    required by q - t / q * t).  w1: (5H, H), b1: (H,), w2: (H, 1), b2: (1,).
    Returns logits of shape (B, N).

    activation_dtype=None ships activations in their own dtype (pass bf16
    inputs, or set activation_dtype=jnp.bfloat16, to halve HBM read traffic).
    matmul_dtype controls the resident weight / MXU operand dtype.
    """
    B, N, H = rule_option.shape
    assert query_context.shape == (B, N, H) and tree_state.shape == (B, N, H)
    rows = B * N
    mm_dtype = jnp.float32 if matmul_dtype is None else jnp.dtype(matmul_dtype)
    act_dtype = (rule_option.dtype if activation_dtype is None
                 else jnp.dtype(activation_dtype))

    # ---- fold the torch.cat into the first-layer weights -------------------
    wr = w1[0 * H:1 * H]
    wq = w1[1 * H:2 * H]
    wt = w1[2 * H:3 * H]
    wd = w1[3 * H:4 * H]            # rows applied to (q - t)
    wp = w1[4 * H:5 * H]            # rows applied to (q * t)
    w1_stack = jnp.stack([wr, wq + wd, wt - wd, wp],
                         axis=0).astype(mm_dtype)            # (4, H, H)
    b1_row = b1.reshape(1, H).astype(jnp.float32)            # (1, H)
    # w2 replicated to 8 rows: keeps the layer-2 LHS a full sublane tile and
    # costs nothing (MXU slack); row 0 of the result is the answer.
    w2_rep = jnp.broadcast_to(w2.reshape(1, H), (8, H)).astype(mm_dtype)
    b2_s = b2.reshape(1).astype(jnp.float32)                 # (1,)  -> SMEM

    # ---- row tiling: multiple of 128, capped at round_up(rows, 128) --------
    rows128 = pl.cdiv(rows, 128) * 128
    tile = max(128, (int(row_tile) // 128) * 128)
    tile = min(tile, rows128)
    grid_m = pl.cdiv(rows, tile)
    rows_p = grid_m * tile
    pad = rows_p - rows

    def prep(x):
        x2 = x.reshape(rows, H).astype(act_dtype)            # free collapse
        return jnp.pad(x2, ((0, pad), (0, 0))) if pad else x2

    r2, q2, t2 = prep(rule_option), prep(query_context), prep(tree_state)

    act_spec = pl.BlockSpec((tile, H), lambda i: (i, 0))
    act_item = jnp.dtype(act_dtype).itemsize
    mm_item = jnp.dtype(mm_dtype).itemsize
    cost = pl.CostEstimate(
        flops=8 * rows_p * H * H            # four K=H partial dots
              + 21 * rows_p * H             # q*t, accumulate adds, bias, layer 2
              + rows_p,
        transcendentals=rows_p * H,
        bytes_accessed=3 * rows_p * H * act_item            # activation reads
                       + rows_p * 4                         # logits write
                       + (4 * H * H + 8 * H) * mm_item      # weights
                       + (H + 1) * 4,                       # biases
    )

    out = pl.pallas_call(
        _scorer_kernel,
        out_shape=jax.ShapeDtypeStruct((1, rows_p), jnp.float32),
        grid_spec=pltpu.PrefetchScalarGridSpec(
            num_scalar_prefetch=0,
            grid=(grid_m,),
            in_specs=[
                act_spec,                                    # rule_option
                act_spec,                                    # query_context
                act_spec,                                    # tree_state
                pl.BlockSpec((4, H, H), lambda i: (0, 0, 0)),   # folded W1
                pl.BlockSpec((1, H), lambda i: (0, 0)),         # b1 row
                pl.BlockSpec((8, H), lambda i: (0, 0)),         # W2 (8 rows)
                pl.BlockSpec(memory_space=pltpu.MemorySpace.SMEM),  # b2 scalar
            ],
            out_specs=pl.BlockSpec((1, tile), lambda i: (0, i)),
        ),
        # On v7x, if a trace shows one TensorCore idle, switch this axis to
        # pltpu.CORE_PARALLEL to shard the row blocks across both cores;
        # "parallel" is kept here because it is safe on single-TC v5e/v6e.
        compiler_params=pltpu.CompilerParams(
            dimension_semantics=("parallel",)),
        cost_estimate=cost,
    )(r2, q2, t2, w1_stack, b1_row, w2_rep, b2_s)

    # Drop row padding, undo the flatten, and mirror the torch .squeeze(-1).
    return out[0, :rows].reshape(B, N)


def _reference(rule_option, query_context, tree_state, w1, b1, w2, b2):
    # Direct translation of the PyTorch module (unfolded weights).
    inp = jnp.concatenate(
        [rule_option, query_context, tree_state,
         query_context - tree_state, query_context * tree_state], axis=-1)
    h = jnp.tanh(inp @ w1 + b1)
    return (h @ w2 + b2).squeeze(-1)


if __name__ == "__main__":
    B, N, H = 2, 8, 32          # batch, opt_num, hid (== context_sz)
    key = jax.random.PRNGKey(0)
    k_r, k_q, k_t, k_w1, k_b1, k_w2, k_b2 = jax.random.split(key, 7)

    rule_option = jax.random.normal(k_r, (B, N, H), jnp.float32)
    query_context = jax.random.normal(k_q, (B, N, H), jnp.float32)
    tree_state = jax.random.normal(k_t, (B, N, H), jnp.float32)

    # Deterministic synthetic MLP params: Linear(5H, H) -> tanh -> Linear(H, 1)
    w1 = jax.random.normal(k_w1, (5 * H, H), jnp.float32) * 0.05
    b1 = jax.random.normal(k_b1, (H,), jnp.float32) * 0.01
    w2 = jax.random.normal(k_w2, (H, 1), jnp.float32) * 0.05
    b2 = jax.random.normal(k_b2, (1,), jnp.float32) * 0.01

    logits = heuristic_mlp_scorer(rule_option, query_context, tree_state,
                                  w1, b1, w2, b2)
    logits = jax.block_until_ready(logits)

    ref = _reference(rule_option, query_context, tree_state, w1, b1, w2, b2)
    assert logits.shape == (B, N)
    # Folded-weight / split-dot summation order differs from the reference
    # only by fp non-associativity (~1e-6 rel), well within this tolerance.
    assert jnp.allclose(logits, ref, atol=1e-4, rtol=1e-4)

    print("KERNEL_OK")
</pallas_src>

<mosaic_0001>
module attributes {stable_mosaic.version = 11 : i64} {
  func.func @_scorer_kernel(%arg0: i32, %arg1: memref<128x32xf32, #tpu.memory_space<vmem>>, %arg2: memref<128x32xf32, #tpu.memory_space<vmem>>, %arg3: memref<128x32xf32, #tpu.memory_space<vmem>>, %arg4: memref<4x32x32xf32, #tpu.memory_space<vmem>>, %arg5: memref<1x32xf32, #tpu.memory_space<vmem>>, %arg6: memref<8x32xf32, #tpu.memory_space<vmem>>, %arg7: memref<1xf32, #tpu.memory_space<smem>>, %arg8: memref<1x128xf32, #tpu.memory_space<vmem>>) attributes {dimension_semantics = [#tpu.dimension_semantics<parallel>], iteration_bounds = array<i64: 1>, scalar_prefetch = 0 : i64, scratch_operands = 0 : i64, tpu.core_type = #tpu.core_type<tc>, window_params = [{transform_indices = @transform_0, window_bounds = array<i64: 128, 32>}, {transform_indices = @transform_1, window_bounds = array<i64: 128, 32>}, {transform_indices = @transform_2, window_bounds = array<i64: 128, 32>}, {pipeline_mode = #tpu.pipeline_mode<synchronous>, transform_indices = @transform_3, window_bounds = array<i64: 4, 32, 32>}, {pipeline_mode = #tpu.pipeline_mode<synchronous>, transform_indices = @transform_4, window_bounds = array<i64: 1, 32>}, {pipeline_mode = #tpu.pipeline_mode<synchronous>, transform_indices = @transform_5, window_bounds = array<i64: 8, 32>}, {transform_indices = @transform_6, window_bounds = array<i64: 1>}, {transform_indices = @transform_7, window_bounds = array<i64: 1, 128>}]} {
    %c0 = arith.constant 0 : index
    %c0_0 = arith.constant 0 : index
    %0 = vector.load %arg1[%c0, %c0_0] : memref<128x32xf32, #tpu.memory_space<vmem>>, vector<128x32xf32>
    %c0_1 = arith.constant 0 : index
    %c0_2 = arith.constant 0 : index
    %1 = vector.load %arg2[%c0_1, %c0_2] : memref<128x32xf32, #tpu.memory_space<vmem>>, vector<128x32xf32>
    %c0_3 = arith.constant 0 : index
    %c0_4 = arith.constant 0 : index
    %2 = vector.load %arg3[%c0_3, %c0_4] : memref<128x32xf32, #tpu.memory_space<vmem>>, vector<128x32xf32>
    %3 = arith.mulf %1, %2 : vector<128x32xf32>
    %c0_5 = arith.constant 0 : index
    %c0_6 = arith.constant 0 : index
    %c0_7 = arith.constant 0 : index
    %4 = vector.load %arg4[%c0_5, %c0_6, %c0_7] : memref<4x32x32xf32, #tpu.memory_space<vmem>>, vector<1x32x32xf32>
    %5 = vector.shape_cast %4 : vector<1x32x32xf32> to vector<32x32xf32>
    %cst = arith.constant dense<0.000000e+00> : vector<128x32xf32>
    %6 = tpu.matmul %0, %5, %cst {dimension_numbers = #tpu.dot_dimension_numbers<[1], [0], [0], [1], [0, 0, 1, 1], [], []>} : vector<128x32xf32>, vector<32x32xf32>, vector<128x32xf32> -> vector<128x32xf32>
    %c1 = arith.constant 1 : index
    %c0_8 = arith.constant 0 : index
    %c0_9 = arith.constant 0 : index
    %7 = vector.load %arg4[%c1, %c0_8, %c0_9] : memref<4x32x32xf32, #tpu.memory_space<vmem>>, vector<1x32x32xf32>
    %8 = vector.shape_cast %7 : vector<1x32x32xf32> to vector<32x32xf32>
    %cst_10 = arith.constant dense<0.000000e+00> : vector<128x32xf32>
    %9 = tpu.matmul %1, %8, %cst_10 {dimension_numbers = #tpu.dot_dimension_numbers<[1], [0], [0], [1], [0, 0, 1, 1], [], []>} : vector<128x32xf32>, vector<32x32xf32>, vector<128x32xf32> -> vector<128x32xf32>
    %10 = arith.addf %6, %9 : vector<128x32xf32>
    %c2 = arith.constant 2 : index
    %c0_11 = arith.constant 0 : index
    %c0_12 = arith.constant 0 : index
    %11 = vector.load %arg4[%c2, %c0_11, %c0_12] : memref<4x32x32xf32, #tpu.memory_space<vmem>>, vector<1x32x32xf32>
    %12 = vector.shape_cast %11 : vector<1x32x32xf32> to vector<32x32xf32>
    %cst_13 = arith.constant dense<0.000000e+00> : vector<128x32xf32>
    %13 = tpu.matmul %2, %12, %cst_13 {dimension_numbers = #tpu.dot_dimension_numbers<[1], [0], [0], [1], [0, 0, 1, 1], [], []>} : vector<128x32xf32>, vector<32x32xf32>, vector<128x32xf32> -> vector<128x32xf32>
    %14 = arith.addf %10, %13 : vector<128x32xf32>
    %c3 = arith.constant 3 : index
    %c0_14 = arith.constant 0 : index
    %c0_15 = arith.constant 0 : index
    %15 = vector.load %arg4[%c3, %c0_14, %c0_15] : memref<4x32x32xf32, #tpu.memory_space<vmem>>, vector<1x32x32xf32>
    %16 = vector.shape_cast %15 : vector<1x32x32xf32> to vector<32x32xf32>
    %cst_16 = arith.constant dense<0.000000e+00> : vector<128x32xf32>
    %17 = tpu.matmul %3, %16, %cst_16 {dimension_numbers = #tpu.dot_dimension_numbers<[1], [0], [0], [1], [0, 0, 1, 1], [], []>} : vector<128x32xf32>, vector<32x32xf32>, vector<128x32xf32> -> vector<128x32xf32>
    %18 = arith.addf %14, %17 : vector<128x32xf32>
    %c0_17 = arith.constant 0 : index
    %c0_18 = arith.constant 0 : index
    %19 = vector.load %arg5[%c0_17, %c0_18] : memref<1x32xf32, #tpu.memory_space<vmem>>, vector<1x32xf32>
    %20 = vector.broadcast %19 : vector<1x32xf32> to vector<128x32xf32>
    %21 = arith.addf %18, %20 : vector<128x32xf32>
    %22 = math.tanh %21 : vector<128x32xf32>
    %c0_19 = arith.constant 0 : index
    %c0_20 = arith.constant 0 : index
    %23 = vector.load %arg6[%c0_19, %c0_20] : memref<8x32xf32, #tpu.memory_space<vmem>>, vector<8x32xf32>
    %cst_21 = arith.constant dense<0.000000e+00> : vector<8x128xf32>
    %24 = tpu.matmul %23, %22, %cst_21 {dimension_numbers = #tpu.dot_dimension_numbers<[1], [1], [0], [0], [0, 0, 1, 0], [], []>} : vector<8x32xf32>, vector<128x32xf32>, vector<8x128xf32> -> vector<8x128xf32>
    %25 = vector.extract_strided_slice %24 {offsets = [0, 0], sizes = [1, 128], strides = [1, 1]} : vector<8x128xf32> to vector<1x128xf32>
    %c0_22 = arith.constant 0 : index
    %26 = memref.load %arg7[%c0_22] : memref<1xf32, #tpu.memory_space<smem>>
    %27 = vector.broadcast %26 : f32 to vector<1x128xf32>
    %28 = arith.addf %25, %27 : vector<1x128xf32>
    %c0_23 = arith.constant 0 : index
    %c0_24 = arith.constant 0 : index
    %29 = vector.load %arg8[%c0_23, %c0_24] : memref<1x128xf32, #tpu.memory_space<vmem>>, vector<1x128xf32>
    tpu.vector_store %arg8[%c0_23, %c0_24], %28 {strides = array<i32>} : memref<1x128xf32, #tpu.memory_space<vmem>>, vector<1x128xf32>,
    return
  }
  func.func @transform_0(%arg0: i32) -> (i32, i32) {
    %c0_i32 = arith.constant 0 : i32
    %c0_i32_0 = arith.constant 0 : i32
    return %arg0, %c0_i32 : i32, i32
  }
  func.func @transform_1(%arg0: i32) -> (i32, i32) {
    %c0_i32 = arith.constant 0 : i32
    %c0_i32_0 = arith.constant 0 : i32
    return %arg0, %c0_i32 : i32, i32
  }
  func.func @transform_2(%arg0: i32) -> (i32, i32) {
    %c0_i32 = arith.constant 0 : i32
    %c0_i32_0 = arith.constant 0 : i32
    return %arg0, %c0_i32 : i32, i32
  }
  func.func @transform_3(%arg0: i32) -> (i32, i32, i32) {
    %c0_i32 = arith.constant 0 : i32
    %c0_i32_0 = arith.constant 0 : i32
    %c0_i32_1 = arith.constant 0 : i32
    %c0_i32_2 = arith.constant 0 : i32
    return %c0_i32, %c0_i32_0, %c0_i32_1 : i32, i32, i32
  }
  func.func @transform_4(%arg0: i32) -> (i32, i32) {
    %c0_i32 = arith.constant 0 : i32
    %c0_i32_0 = arith.constant 0 : i32
    %c0_i32_1 = arith.constant 0 : i32
    return %c0_i32, %c0_i32_0 : i32, i32
  }
  func.func @transform_5(%arg0: i32) -> (i32, i32) {
    %c0_i32 = arith.constant 0 : i32
    %c0_i32_0 = arith.constant 0 : i32
    %c0_i32_1 = arith.constant 0 : i32
    return %c0_i32, %c0_i32_0 : i32, i32
  }
  func.func @transform_6(%arg0: i32) -> i32 {
    %c0_i32 = arith.constant 0 : i32
    %c0_i32_0 = arith.constant 0 : i32
    return %c0_i32 : i32
  }
  func.func @transform_7(%arg0: i32) -> (i32, i32) {
    %c0_i32 = arith.constant 0 : i32
    %c0_i32_0 = arith.constant 0 : i32
    return %c0_i32, %arg0 : i32, i32
  }
}

</mosaic_0001>

<bundles_post_ra>
// kernel: squeeze.1
= control target key start
LH: loop header
LB: loop body
LE: loop exit
PB: predicated region body
PF: predicated region fallthrough
CT: control target
= control target key end

     0   :  { %s77_s0 = inlined_call_operand.vmem [shape: f32[16], index: 0, kind: input, shape index: {}]   ;;  %s78_s1 = inlined_call_operand.hbm [shape: f32[2,8], index: 1, kind: output, shape index: {}]  }
   0x1   :  { %v6_v0 = vld [vmem:[%s77_s0] sm:$0x1] }
   0x2   :  { %2 = vsyncpa [#allocation1], 0  ;;  %7 = vst [vmem:[#allocation3] sm:$0x1] %v6_v0  ;;  %vm9_vm0 = vcmask 64512   ;;  %s59_s0 = smov 120  }
   0x3   :  { %s60_s8 = smov [#allocation0]  }
   0x4   :  { %s29_s9 = sshll.u32 %s60_s8, 4  ;;  %s30_s9 = int_to_ptr.vmem [resolvable:$true] %s29_s9 }
   0x5   :  { %s37_s10 = scalar_lea.vmem %s30_s9, 32  ;;  %p42_p1 = scmp.lt.s32.totalorder %s30_s9, %s30_s9 }
   0x6   :  { %p38_p0 = scmp.ne.s32.totalorder %s30_s9, %s37_s10  ;;  %p43_p2 = scmp.lt.s32.totalorder %s37_s10, %s37_s10 }
   0x8   :  { %p44_p3 = por %p43_p2, %p42_p1 }
   0x9   :  { %v11_v1 = vld [vmem:[#allocation3] sm:$0x1]  }
   0xa   :  { %v8_v2 = vld [vmem:[#allocation3] sm:$0x1]   ;;  %12 = vrot.lane.b32.xlu0 %v11_v1, %s59_s0  ;;  %p45_p4 = pnand %p44_p3, %p38_p0 }
   0xb   :  { %10 = vst.msk [vmem:[#allocation2] sm:$0x1] %vm9_vm0, %v8_v2  }
  0x7c   :  { %v13_v3 = vpop.permute.xlu0 %12  }
  0x7d   :  { %16 = vst.msk [vmem:[#allocation2 + $0x1] sm:$0x1] %vm9_vm0, %v13_v3  }
  0x84   :  { %v21_v4 = vld [vmem:[#allocation2] sm:$0x3] }
  0x85   :  { %24 = vst [vmem:[#allocation0] sm:$0x3] %v21_v4 }
  0x86   :  { %48 = shalt.err (!%p45_p4)
}
  0x87   :  { %32 = dma.vmem_to_hbm [thread:$0]  %s30_s9, 32, %s78_s1, [#allocation1]  }
  0x88   :  { %57 = dma.done.wait [#allocation1], 32  }
  0x89   :  { %58 = vsyncadd [#allocation1], 4294967264 }
  0x8a   :  { %34 = vsyncpa [#allocation1], 1 }

// kernel: heuristic_mlp_scorer.1
= control target key start
LH: loop header
LB: loop body
LE: loop exit
PB: predicated region body
PF: predicated region fallthrough
CT: control target
= control target key end

     0   :  { %vm100_vm0 = vcmask 261120   ;;  %vm1481_vm1 = vmmov 0   ;;  %s1993_s3 = inlined_call_operand.vmem [shape: f32[4,32,32], index: 3, kind: input, shape index: {}]   ;;  %s1994_s1 = inlined_call_operand.vmem [shape: f32[128,32], index: 1, kind: input, shape index: {}]   ;;  %s1995_s0 = inlined_call_operand.vmem [shape: f32[128,32], index: 0, kind: input, shape index: {}]   ;;  %s1996_s2 = inlined_call_operand.vmem [shape: f32[128,32], index: 2, kind: input, shape index: {}]   ;;  %s1997_s4 = inlined_call_operand.vmem [shape: f32[1,32], index: 4, kind: input, shape index: {}]   ;;  %s1998_s5 = inlined_call_operand.vmem [shape: f32[8,32], index: 5, kind: input, shape index: {}]   ;;  %s1999_s6 = inlined_call_operand.<no memory space> [shape: f32[1], index: 6, kind: input, shape index: {}]   ;;  %s2000_s7 = inlined_call_operand.vmem [shape: f32[1,128], index: 7, kind: output, shape index: {}]  }
   0x1   :  { %v1087_v0 = vld [vmem:[%s1993_s3 + $0x38] sm:$0xff]  ;;  %v1086_v1 = vld [vmem:[%s1993_s3 + $0x30] sm:$0xff]  ;;  %v1085_v2 = vld [vmem:[%s1993_s3 + $0x28] sm:$0xff] }
   0x2   :  { %1438 = vmatprep.subr.mxu1 %v1087_v0  ;;  %1275 = vmatprep.subr.mxu0 %v1087_v0  ;;  %v1084_v3 = vld [vmem:[%s1993_s3 + $0x20] sm:$0xff]  ;;  %v1542_v5 = vld [vmem:[%s1994_s1 + $0x48] sm:$0xff]  ;;  %v94_v6 = vld [vmem:[%s1993_s3 + $0x18] sm:$0xff] }
   0x3   :  { %1442 = vmatpush3.msra.mxu1 %v1087_v0  ;;  %1276 = vmatpush3.msra.mxu0 %v1087_v0  ;;  %v1537_v4 = vld [vmem:[%s1994_s1 + $0x40] sm:$0xff]  ;;  %v1557_v8 = vld [vmem:[%s1994_s1 + $0x8] sm:$0xff]  ;;  %v1564_v9 = vld [vmem:[%s1994_s1 + $0x50] sm:$0xff] }
   0x4   :  { %1439 = vmatprep.subr.mxu1 %v1086_v1  ;;  %1277 = vmatprep.subr.mxu0 %v1086_v1  ;;  %v1552_v7 = vld [vmem:[%s1994_s1] sm:$0xff]  ;;  %v93_v10 = vld [vmem:[%s1993_s3 + $0x10] sm:$0xff]  ;;  %v1574_v11 = vld [vmem:[%s1994_s1 + $0x58] sm:$0xff] }
   0x5   :  { %1443 = vmatpush3.msra.mxu1 %v1086_v1  ;;  %1278 = vmatpush3.msra.mxu0 %v1086_v1  ;;  %v1579_v12 = vld [vmem:[%s1994_s1 + $0x10] sm:$0xff]  ;;  %v1586_v13 = vld [vmem:[%s1994_s1 + $0x60] sm:$0xff]  ;;  %v1593_v14 = vld [vmem:[%s1994_s1 + $0x18] sm:$0xff] }
   0x6   :  { %1440 = vmatprep.subr.mxu1 %v1085_v2  ;;  %1279 = vmatprep.subr.mxu0 %v1085_v2  ;;  %v92_v15 = vld [vmem:[%s1993_s3 + $0x8] sm:$0xff]  ;;  %v1605_v16 = vld [vmem:[%s1994_s1 + $0x20] sm:$0xff]  ;;  %v1123_v18 = vld [vmem:[%s1993_s3 + $0x58] sm:$0xff] }
   0x7   :  { %1444 = vmatpush3.msra.mxu1 %v1085_v2  ;;  %1280 = vmatpush3.msra.mxu0 %v1085_v2  ;;  %v1612_v17 = vld [vmem:[%s1994_s1 + $0x68] sm:$0xff]  ;;  %v1622_v19 = vld [vmem:[%s1994_s1 + $0x70] sm:$0xff]  ;;  %v91_v21 = vld [vmem:[%s1993_s3] sm:$0xff] }
   0x8   :  { %1441 = vmatprep.subr.mxu1 %v1084_v3  ;;  %1295 = vmatprep.mubr.msk.f32.mxu1 %vm100_vm0, %v1537_v4  ;;  %v1629_v20 = vld [vmem:[%s1994_s1 + $0x28] sm:$0xff]  ;;  %v1122_v22 = vld [vmem:[%s1993_s3 + $0x50] sm:$0xff]  ;;  %v1649_v24 = vld [vmem:[%s1994_s1 + $0x78] sm:$0xff] }
   0x9   :  { %1445 = vmatpush3.msra.mxu1 %v1084_v3  ;;  %1281 = vmatprep.subr.mxu0 %v1084_v3  ;;  %v1642_v23 = vld [vmem:[%s1994_s1 + $0x30] sm:$0xff]  ;;  %v1121_v25 = vld [vmem:[%s1993_s3 + $0x48] sm:$0xff]  ;;  %v1661_v26 = vld [vmem:[%s1994_s1 + $0x38] sm:$0xff] }
   0xa   :  { %1296 = vmatmul.mubr.msk.f32.vlgmr.msra.gmra.mxu1 %vm100_vm0, %v1542_v5  ;;  %1307 = vmatprep.subr.mxu1 %v94_v6  ;;  %v27_v27 = vld [vmem:[%s1995_s0] sm:$0xff]  ;;  %v1143_v28 = vld [vmem:[%s1993_s3 + $0x78] sm:$0xff]  ;;  %v28_v29 = vld [vmem:[%s1995_s0 + $0x8] sm:$0xff] }
   0xb   :  { %1282 = vmatpush3.msra.mxu0 %v1084_v3  ;;  %1283 = vmatprep.mubr.msk.f32.mxu0 %vm100_vm0, %v1552_v7  ;;  %v1120_v30 = vld [vmem:[%s1993_s3 + $0x40] sm:$0xff]  ;;  %v1688_v32 = vld [vmem:[%s1996_s2 + $0x8] sm:$0xff]  ;;  %v29_v33 = vld [vmem:[%s1995_s0 + $0x10] sm:$0xff] }
   0xc   :  { %1308 = vmatpush3.msra.mxu1 %v94_v6  ;;  %1284 = vmatmul.mubr.msk.f32.vlgmr.msra.gmra.mxu0 %vm100_vm0, %v1557_v8  ;;  %v1680_v31 = vld [vmem:[%s1996_s2] sm:$0xff]  ;;  %v1697_v34 = vld [vmem:[%s1996_s2 + $0x10] sm:$0xff]  ;;  %v30_v35 = vld [vmem:[%s1995_s0 + $0x18] sm:$0xff]  ;;  %v76_v1 = vmul.f32 %v1688_v32, %v1557_v8 }
   0xd   :  { %1298 = vmatprep.mubr.msk.f32.mxu1 %vm100_vm0, %v1564_v9  ;;  %1309 = vmatprep.subr.mxu1 %v93_v10  ;;  %v1142_v36 = vld [vmem:[%s1993_s3 + $0x70] sm:$0xff]  ;;  %v31_v37 = vld [vmem:[%s1995_s0 + $0x20] sm:$0xff]  ;;  %v62_v38 = vld [vmem:[%s1996_s2 + $0x18] sm:$0xff]  ;;  %v75_v62 = vmul.f32 %v1680_v31, %v1552_v7  ;;  %v77_v2 = vmul.f32 %v1697_v34, %v1579_v12 }
   0xe   :  { %1299 = vmatmul.mubr.msk.f32.gmra.mxu1 %vm100_vm0, %v1574_v11  ;;  %1286 = vmatprep.mubr.msk.f32.mxu0 %vm100_vm0, %v1579_v12  ;;  %v1141_v39 = vld [vmem:[%s1993_s3 + $0x68] sm:$0xff]  ;;  %v63_v40 = vld [vmem:[%s1996_s2 + $0x20] sm:$0xff]  ;;  %v33_v43 = vld [vmem:[%s1995_s0 + $0x30] sm:$0xff]  ;;  %v78_v3 = vmul.f32 %v62_v38, %v1593_v14 }
   0xf   :  { %1310 = vmatpush3.msra.mxu1 %v93_v10  ;;  %1301 = vmatprep.mubr.msk.f32.mxu1 %vm100_vm0, %v1586_v13  ;;  %v32_v41 = vld [vmem:[%s1995_s0 + $0x28] sm:$0xff]  ;;  %v1140_v42 = vld [vmem:[%s1993_s3 + $0x60] sm:$0xff]  ;;  %v65_v45 = vld [vmem:[%s1996_s2 + $0x30] sm:$0xff]  ;;  %v79_v6 = vmul.f32 %v63_v40, %v1605_v16 }
  0x10   :  { %1287 = vmatmul.mubr.msk.f32.gmra.mxu0 %vm100_vm0, %v1593_v14  ;;  %1311 = vmatprep.subr.mxu1 %v92_v15  ;;  %v64_v44 = vld [vmem:[%s1996_s2 + $0x28] sm:$0xff]  ;;  %v34_v46 = vld [vmem:[%s1995_s0 + $0x38] sm:$0xff]  ;;  %v35_v47 = vld [vmem:[%s1995_s0 + $0x40] sm:$0xff]  ;;  %v81_v8 = vmul.f32 %v65_v45, %v1642_v23 }
  0x11   :  { %1289 = vmatprep.mubr.msk.f32.mxu0 %vm100_vm0, %v1605_v16  ;;  %1312 = vmatpush3.msra.mxu1 %v92_v15  ;;  %v66_v48 = vld [vmem:[%s1996_s2 + $0x38] sm:$0xff]  ;;  %v67_v49 = vld [vmem:[%s1996_s2 + $0x40] sm:$0xff]  ;;  %v36_v50 = vld [vmem:[%s1995_s0 + $0x48] sm:$0xff]  ;;  %v80_v7 = vmul.f32 %v64_v44, %v1629_v20 }
  0x12   :  { %1302 = vmatmul.mubr.msk.f32.gmra.mxu1 %vm100_vm0, %v1612_v17  ;;  %1339 = vmatprep.subr.mxu0 %v1123_v18  ;;  %v37_v51 = vld [vmem:[%s1995_s0 + $0x50] sm:$0xff]  ;;  %v68_v52 = vld [vmem:[%s1996_s2 + $0x48] sm:$0xff]  ;;  %v38_v54 = vld [vmem:[%s1995_s0 + $0x58] sm:$0xff]  ;;  %v82_v10 = vmul.f32 %v66_v48, %v1661_v26  ;;  %v83_v12 = vmul.f32 %v67_v49, %v1537_v4 }
  0x13   :  { %1304 = vmatprep.mubr.msk.f32.mxu1 %vm100_vm0, %v1622_v19  ;;  %1340 = vmatpush3.msra.mxu0 %v1123_v18  ;;  %v69_v53 = vld [vmem:[%s1996_s2 + $0x50] sm:$0xff]  ;;  %v39_v55 = vld [vmem:[%s1995_s0 + $0x60] sm:$0xff]  ;;  %v70_v56 = vld [vmem:[%s1996_s2 + $0x58] sm:$0xff]  ;;  %v84_v14 = vmul.f32 %v68_v52, %v1542_v5 }
  0x14   :  { %1290 = vmatmul.mubr.msk.f32.gmra.mxu0 %vm100_vm0, %v1629_v20  ;;  %1313 = vmatprep.subr.mxu1 %v91_v21  ;;  %v71_v57 = vld [vmem:[%s1996_s2 + $0x60] sm:$0xff]  ;;  %v40_v58 = vld [vmem:[%s1995_s0 + $0x68] sm:$0xff]  ;;  %v41_v59 = vld [vmem:[%s1995_s0 + $0x70] sm:$0xff]  ;;  %v85_v15 = vmul.f32 %v69_v53, %v1564_v9  ;;  %v86_v16 = vmul.f32 %v70_v56, %v1574_v11  ;;  %v1480_v11 = vmov 0.0  }
  0x15   :  { %1341 = vmatprep.subr.mxu0 %v1122_v22  ;;  %1292 = vmatprep.mubr.msk.f32.mxu0 %vm100_vm0, %v1642_v23  ;;  %v72_v60 = vld [vmem:[%s1996_s2 + $0x68] sm:$0xff]  ;;  %v73_v61 = vld [vmem:[%s1996_s2 + $0x70] sm:$0xff]  ;;  %v42_v63 = vld [vmem:[%s1995_s0 + $0x78] sm:$0xff]  ;;  %v87_v18 = vmul.f32 %v71_v57, %v1586_v13 }
  0x16   :  { %1305 = vmatmul.mubr.msk.f32.gmra.mxu1 %vm100_vm0, %v1649_v24  ;;  %1342 = vmatpush3.msra.mxu0 %v1122_v22  ;;  %v74_v0 = vld [vmem:[%s1996_s2 + $0x78] sm:$0xff]  ;;  %v88_v4 = vmul.f32 %v72_v60, %v1612_v17  ;;  %v89_v5 = vmul.f32 %v73_v61, %v1622_v19 }
  0x17   :  { %1314 = vmatpush3.msra.mxu1 %v91_v21  ;;  %1343 = vmatprep.subr.mxu0 %v1121_v25  ;;  %v90_v9 = vmul.f32 %v74_v0, %v1649_v24 }
  0x18   :  { %1293 = vmatmul.mubr.msk.f32.gmra.mxu0 %vm100_vm0, %v1661_v26  ;;  %1315 = vmatprep.mubr.msk.f32.mxu1 %vm100_vm0, %v27_v27 }
  0x19   :  { %1344 = vmatpush3.msra.mxu0 %v1121_v25  ;;  %1371 = vmatprep.subr.mxu1 %v1143_v28 }
  0x1a   :  { %1316 = vmatmul.mubr.msk.f32.vlgmr.msra.gmra.mxu1 %vm100_vm0, %v28_v29  ;;  %1345 = vmatprep.subr.mxu0 %v1120_v30 }
  0x1b   :  { %1346 = vmatpush3.msra.mxu0 %v1120_v30  ;;  %1347 = vmatprep.mubr.msk.f32.mxu0 %vm100_vm0, %v1680_v31 }
  0x1c   :  { %1372 = vmatpush3.msra.mxu1 %v1143_v28  ;;  %1348 = vmatmul.mubr.msk.f32.vlgmr.msra.gmra.mxu0 %vm100_vm0, %v1688_v32 }
  0x1d   :  { %1318 = vmatprep.mubr.msk.f32.mxu1 %vm100_vm0, %v29_v33  ;;  %1350 = vmatprep.mubr.msk.f32.mxu0 %vm100_vm0, %v1697_v34 }
  0x1e   :  { %1319 = vmatmul.mubr.msk.f32.gmra.mxu1 %vm100_vm0, %v30_v35  ;;  %1373 = vmatprep.subr.mxu1 %v1142_v36 }
  0x1f   :  { %1321 = vmatprep.mubr.msk.f32.mxu1 %vm100_vm0, %v31_v37  ;;  %1374 = vmatpush3.msra.mxu1 %v1142_v36 }
  0x20   :  { %1351 = vmatmul.mubr.msk.f32.gmra.mxu0 %vm100_vm0, %v62_v38  ;;  %1375 = vmatprep.subr.mxu1 %v1141_v39 }
  0x21   :  { %1353 = vmatprep.mubr.msk.f32.mxu0 %vm100_vm0, %v63_v40  ;;  %1376 = vmatpush3.msra.mxu1 %v1141_v39 }
  0x22   :  { %1322 = vmatmul.mubr.msk.f32.gmra.mxu1 %vm100_vm0, %v32_v41  ;;  %1377 = vmatprep.subr.mxu1 %v1140_v42 }
  0x23   :  { %1324 = vmatprep.mubr.msk.f32.mxu1 %vm100_vm0, %v33_v43  ;;  %1378 = vmatpush3.msra.mxu1 %v1140_v42 }
  0x24   :  { %1354 = vmatmul.mubr.msk.f32.gmra.mxu0 %vm100_vm0, %v64_v44  ;;  %1403 = vmatprep.subr.mxu0 %v1480_v11 }
  0x25   :  { %1356 = vmatprep.mubr.msk.f32.mxu0 %vm100_vm0, %v65_v45 }
  0x26   :  { %1325 = vmatmul.mubr.msk.f32.gmra.mxu1 %vm100_vm0, %v34_v46 }
  0x27   :  { %1327 = vmatprep.mubr.msk.f32.mxu1 %vm100_vm0, %v35_v47 }
  0x28   :  { %1357 = vmatmul.mubr.msk.f32.gmra.mxu0 %vm100_vm0, %v66_v48 }
  0x29   :  { %1359 = vmatprep.mubr.msk.f32.mxu0 %vm100_vm0, %v67_v49 }
  0x2a   :  { %1328 = vmatmul.mubr.msk.f32.gmra.mxu1 %vm100_vm0, %v36_v50 }
  0x2b   :  { %1330 = vmatprep.mubr.msk.f32.mxu1 %vm100_vm0, %v37_v51 }
  0x2c   :  { %1360 = vmatmul.mubr.msk.f32.gmra.mxu0 %vm100_vm0, %v68_v52 }
  0x2d   :  { %1362 = vmatprep.mubr.msk.f32.mxu0 %vm100_vm0, %v69_v53 }
  0x2e   :  { %1331 = vmatmul.mubr.msk.f32.gmra.mxu1 %vm100_vm0, %v38_v54 }
  0x2f   :  { %1333 = vmatprep.mubr.msk.f32.mxu1 %vm100_vm0, %v39_v55 }
  0x30   :  { %1363 = vmatmul.mubr.msk.f32.gmra.mxu0 %vm100_vm0, %v70_v56 }
  0x31   :  { %1365 = vmatprep.mubr.msk.f32.mxu0 %vm100_vm0, %v71_v57 }
  0x32   :  { %1334 = vmatmul.mubr.msk.f32.gmra.mxu1 %vm100_vm0, %v40_v58 }
  0x33   :  { %1336 = vmatprep.mubr.msk.f32.mxu1 %vm100_vm0, %v41_v59 }
  0x34   :  { %1366 = vmatmul.mubr.msk.f32.gmra.mxu0 %vm100_vm0, %v72_v60 }
  0x35   :  { %1368 = vmatprep.mubr.msk.f32.mxu0 %vm100_vm0, %v73_v61 }
  0x36   :  { %1337 = vmatmul.mubr.msk.f32.gmra.mxu1 %vm100_vm0, %v42_v63 }
  0x37   :  { %1379 = vmatprep.mubr.msk.f32.mxu1 %vm100_vm0, %v75_v62 }
  0x38   :  { %1369 = vmatmul.mubr.msk.f32.gmra.mxu0 %vm100_vm0, %v74_v0 }
  0x39   :  { %1435 = vmatprep.mubr.msk.f32.mxu0 %vm1481_vm1, %v1480_v11 }
  0x3a   :  { %1380 = vmatmul.mubr.msk.f32.vlgmr.msra.gmra.mxu1 %vm100_vm0, %v76_v1 }
  0x3b   :  { %1382 = vmatprep.mubr.msk.f32.mxu1 %vm100_vm0, %v77_v2 }
  0x3e   :  { %1383 = vmatmul.mubr.msk.f32.gmra.mxu1 %vm100_vm0, %v78_v3 }
  0x3f   :  { %1385 = vmatprep.mubr.msk.f32.mxu1 %vm100_vm0, %v79_v6 }
  0x42   :  { %1386 = vmatmul.mubr.msk.f32.gmra.mxu1 %vm100_vm0, %v80_v7 }
  0x43   :  { %1388 = vmatprep.mubr.msk.f32.mxu1 %vm100_vm0, %v81_v8 }
  0x46   :  { %1389 = vmatmul.mubr.msk.f32.gmra.mxu1 %vm100_vm0, %v82_v10 }
  0x47   :  { %1391 = vmatprep.mubr.msk.f32.mxu1 %vm100_vm0, %v83_v12 }
  0x4a   :  { %1392 = vmatmul.mubr.msk.f32.gmra.mxu1 %vm100_vm0, %v84_v14 }
  0x4b   :  { %1394 = vmatprep.mubr.msk.f32.mxu1 %vm100_vm0, %v85_v15 }
  0x4e   :  { %1395 = vmatmul.mubr.msk.f32.gmra.mxu1 %vm100_vm0, %v86_v16 }
  0x4f   :  { %1397 = vmatprep.mubr.msk.f32.mxu1 %vm100_vm0, %v87_v18 }
  0x52   :  { %1398 = vmatmul.mubr.msk.f32.gmra.mxu1 %vm100_vm0, %v88_v4 }
  0x53   :  { %1400 = vmatprep.mubr.msk.f32.mxu1 %vm100_vm0, %v89_v5 }
  0x56   :  { %1401 = vmatmul.mubr.msk.f32.gmra.mxu1 %vm100_vm0, %v90_v9 }
  0xca   :  { %v1297_v13 = vpop.f32.mrf.mxu1 }
  0xcc   :  { %v1285_v20 = vpop.f32.mrf.mxu0  ;;  %v255_v17 = vpop.f32.mrf.mxu1 }
  0xce   :  { %v215_v21 = vpop.f32.mrf.mxu0  ;;  %v1855_v22 = vpop.f32.mrf.mxu1 }
  0xd0   :  { %v1288_v19 = vpop.f32.mrf.mxu0  ;;  %v1857_v23 = vpop.f32.mrf.mxu1 }
  0xd2   :  { %v225_v25 = vpop.f32.mrf.mxu0  ;;  %v1859_v24 = vpop.f32.mrf.mxu1 }
  0xd4   :  { %v1291_v26 = vpop.f32.mrf.mxu0  ;;  %v1861_v27 = vpop.f32.mrf.mxu1 }
  0xd6   :  { %v235_v28 = vpop.f32.mrf.mxu0  ;;  %v1863_v29 = vpop.f32.mrf.mxu1 }
  0xd8   :  { %v1865_v30 = vpop.f32.mrf.mxu0  ;;  %v1867_v31 = vpop.f32.mrf.mxu1 }
  0xda   :  { %v245_v32 = vpop.f32.mrf.mxu0  ;;  %v1317_v33 = vpop.f32.mrf.mxu1 }
  0xdb   :  { %v414_v34 = vadd.f32 %v1317_v33, %v1285_v20 }
  0xdc   :  { %v408_v35 = vpop.f32.mrf.mxu1  ;;  %v1349_v36 = vpop.f32.mrf.mxu0 }
  0xdd   :  { %v409_v37 = vadd.f32 %v408_v35, %v215_v21  ;;  %v686_v38 = vadd.f32 %v1349_v36, %v414_v34 }
  0xde   :  { %v1320_v39 = vpop.f32.mrf.mxu1  ;;  %v606_v40 = vpop.f32.mrf.mxu0 }
  0xdf   :  { %v424_v41 = vadd.f32 %v1320_v39, %v1288_v19  ;;  %v685_v42 = vadd.f32 %v606_v40, %v409_v37 }
  0xe0   :  { %v418_v43 = vpop.f32.mrf.mxu1  ;;  %v1352_v44 = vpop.f32.mrf.mxu0 }
  0xe1   :  { %v419_v45 = vadd.f32 %v418_v43, %v225_v25  ;;  %v688_v46 = vadd.f32 %v1352_v44, %v424_v41 }
  0xe2   :  { %v1323_v47 = vpop.f32.mrf.mxu1  ;;  %v616_v48 = vpop.f32.mrf.mxu0 }
  0xe3   :  { %v1869_v49 = vadd.f32 %v1323_v47, %v1291_v26  ;;  %v687_v50 = vadd.f32 %v616_v48, %v419_v45  ;;  %v1912_v47 = vld [vmem:[%s1997_s4] ss:$0 sm:$0xff] }
  0xe4   :  { %v428_v51 = vpop.f32.mrf.mxu1  ;;  %v1876_v54 = vpop.f32.mrf.mxu0 }
  0xe5   :  { %v1871_v52 = vadd.f32 %v428_v51, %v235_v28 }
  0xe6   :  { %v1873_v53 = vpop.f32.mrf.mxu1  ;;  %v1882_v59 = vpop.f32.mrf.mxu0 }
  0xe8   :  { %v438_v55 = vpop.f32.mrf.mxu1  ;;  %v1886_v63 = vpop.f32.mrf.mxu0 }
  0xe9   :  { %v1878_v56 = vadd.f32 %v438_v55, %v245_v32 }
  0xea   :  { %v1329_v57 = vpop.f32.mrf.mxu1  ;;  %v1888_v2 = vpop.f32.mrf.mxu0 }
  0xeb   :  { %v1880_v58 = vadd.f32 %v1329_v57, %v1297_v13 }
  0xec   :  { %v448_v60 = vpop.f32.mrf.mxu1  ;;  %v1361_v7 = vpop.f32.mrf.mxu0 }
  0xed   :  { %v1884_v61 = vadd.f32 %v448_v60, %v255_v17 }
  0xee   :  { %v1332_v62 = vpop.f32.mrf.mxu1  ;;  %v1892_v14 = vpop.f32.mrf.mxu0 }
  0xef   :  { %v464_v57 = vadd.f32 %v1332_v62, %v1855_v22  ;;  %v694_v22 = vadd.f32 %v1361_v7, %v1880_v58 }
  0xf0   :  { %v458_v0 = vpop.f32.mrf.mxu1  ;;  %v1364_v5 = vpop.f32.mrf.mxu0 }
  0xf2   :  { %v1335_v1 = vpop.f32.mrf.mxu1  ;;  %v656_v17 = vpop.f32.mrf.mxu0 }
  0xf4   :  { %v468_v3 = vpop.f32.mrf.mxu1  ;;  %v1367_v25 = vpop.f32.mrf.mxu0 }
  0xf6   :  { %v1338_v6 = vpop.f32.mrf.mxu1  ;;  %v666_v32 = vpop.f32.mrf.mxu0 }
  0xf7   :  { %v484_v37 = vadd.f32 %v1338_v6, %v1863_v29 }
  0xf8   :  { %v478_v8 = vpop.f32.mrf.mxu1  ;;  %v1370_v35 = vpop.f32.mrf.mxu0 }
  0xf9   :  { %v479_v39 = vadd.f32 %v478_v8, %v1867_v31  ;;  %v700_v43 = vadd.f32 %v1370_v35, %v484_v37  ;;  %v459_v8 = vadd.f32 %v458_v0, %v1857_v23 }
  0xfa   :  { %v1381_v10 = vpop.f32.mrf.mxu1  ;;  %v676_v40 = vpop.f32.mrf.mxu0 }
  0xfb   :  { %v1890_v12 = vadd.f32 %v1381_v10, %v686_v38  ;;  %v699_v45 = vadd.f32 %v676_v40, %v479_v39  ;;  %v696_v10 = vadd.f32 %v1364_v5, %v464_v57  ;;  %v444_v5 = vadd.f32 %v1873_v53, %v1865_v30 }
  0xfc   :  { %v820_v15 = vpop.f32.mrf.mxu1 }
  0xfd   :  { %v1894_v16 = vadd.f32 %v820_v15, %v685_v42  ;;  %v474_v42 = vadd.f32 %v1335_v1, %v1859_v24  ;;  %v923_v39 = vadd.f32 %v1912_v47, %v1890_v12 }
  0xfe   :  { %v1384_v18 = vpop.f32.mrf.mxu1 }
  0xff   :  { %v1896_v4 = vadd.f32 %v1384_v18, %v688_v46  ;;  %v698_v29 = vadd.f32 %v1367_v25, %v474_v42  ;;  %v922_v40 = vadd.f32 %v1912_v47, %v1894_v16 }
 0x100   :  { %v830_v9 = vpop.f32.mrf.mxu1 }
 0x101   :  { %v1898_v13 = vadd.f32 %v830_v9, %v687_v50  ;;  %v469_v50 = vadd.f32 %v468_v3, %v1861_v27  ;;  %v695_v3 = vadd.f32 %v656_v17, %v459_v8  ;;  %v693_v17 = vadd.f32 %v1892_v14, %v1884_v61 }
 0x102   :  { %v1900_v20 = vpop.f32.mrf.mxu1  ;;  %v691_v61 = vadd.f32 %v1888_v2, %v1878_v56 }
 0x103   :  { %v697_v60 = vadd.f32 %v666_v32, %v469_v50 }
 0x104   :  { %v1902_v21 = vpop.f32.mrf.mxu1 }
 0x106   :  { %v1390_v19 = vpop.f32.mrf.mxu1 }
 0x108   :  { %v1904_v26 = vpop.f32.mrf.mxu1 }
 0x10a   :  { %v1393_v28 = vpop.f32.mrf.mxu1 }
 0x10b   :  { %v908_v62 = vadd.f32 %v1393_v28, %v694_v22  ;;  %v692_v28 = vadd.f32 %v1886_v63, %v444_v5  ;;  %v905_v63 = vadd.f32 %v1904_v26, %v691_v61 }
 0x10c   :  { %v860_v33 = vpop.f32.mrf.mxu1 }
 0x10d   :  { %v931_v58 = vadd.f32 %v1912_v47, %v908_v62  ;;  %v907_v7 = vadd.f32 %v860_v33, %v693_v17  ;;  %v928_v56 = vadd.f32 %v1912_v47, %v905_v63 }
 0x10e   :  { %v1396_v34 = vpop.f32.mrf.mxu1 }
 0x10f   :  { %v910_v15 = vadd.f32 %v1396_v34, %v696_v10  ;;  %v906_v34 = vadd.f32 %v1390_v19, %v692_v28  ;;  %v930_v30 = vadd.f32 %v1912_v47, %v907_v7  ;;  %v690_v19 = vadd.f32 %v1876_v54, %v1869_v49 }
 0x110   :  { %v870_v36 = vpop.f32.mrf.mxu1 }
 0x111   :  { %v933_v18 = vadd.f32 %v1912_v47, %v910_v15  ;;  %v909_v9 = vadd.f32 %v870_v36, %v695_v3  ;;  %v929_v14 = vadd.f32 %v1912_v47, %v906_v34  ;;  %v904_v35 = vadd.f32 %v1900_v20, %v690_v19 }
 0x112   :  { %v1399_v38 = vpop.f32.mrf.mxu1  ;;  %v689_v36 = vadd.f32 %v1882_v59, %v1871_v52  ;;  %v925_v52 = vadd.f32 %v1912_v47, %v1896_v4 }
 0x113   :  { %v912_v55 = vadd.f32 %v1399_v38, %v698_v29  ;;  %v932_v23 = vadd.f32 %v1912_v47, %v909_v9  ;;  %v927_v26 = vadd.f32 %v1912_v47, %v904_v35 }
 0x114   :  { %v880_v41 = vpop.f32.mrf.mxu1  ;;  %v903_v49 = vadd.f32 %v1902_v21, %v689_v36  ;;  %v924_v21 = vadd.f32 %v1912_v47, %v1898_v13 }
 0x115   :  { %v935_v1 = vadd.f32 %v1912_v47, %v912_v55  ;;  %v911_v6 = vadd.f32 %v880_v41, %v697_v60 }
 0x116   :  { %v1402_v44 = vpop.f32.mrf.mxu1  ;;  %v926_v20 = vadd.f32 %v1912_v47, %v903_v49 }
 0x117   :  { %v914_v46 = vadd.f32 %v1402_v44, %v700_v43  ;;  %v934_v27 = vadd.f32 %v1912_v47, %v911_v6  ;;  %v954_v43 = vld [vmem:[%s1998_s5] sm:$0xff]  ;;  %v1077_v44 = vstv %s1999_s6 }
 0x118   :  { %v890_v48 = vpop.f32.mrf.mxu1 }
 0x119   :  { %v937_v51 = vadd.f32 %v1912_v47, %v914_v46  ;;  %v913_v31 = vadd.f32 %v890_v48, %v699_v45 }
 0x11b   :  { %1448 = vtanh.f32 %v937_v51  ;;  %v936_v24 = vadd.f32 %v1912_v47, %v913_v31 }
 0x11d   :  { %1450 = vtanh.f32 %v936_v24 }
 0x11e   :  { %1452 = vtanh.f32 %v935_v1 }
 0x11f   :  { %1454 = vtanh.f32 %v934_v27 }
 0x120   :  { %1456 = vtanh.f32 %v933_v18 }
 0x121   :  { %1458 = vtanh.f32 %v932_v23 }
 0x122   :  { %1460 = vtanh.f32 %v931_v58 }
 0x123   :  { %1462 = vtanh.f32 %v930_v30 }
 0x124   :  { %1464 = vtanh.f32 %v929_v14 }
 0x125   :  { %1466 = vtanh.f32 %v928_v56 }
 0x126   :  { %1468 = vtanh.f32 %v927_v26 }
 0x127   :  { %1470 = vtanh.f32 %v926_v20 }
 0x128   :  { %v1449_v25 = vpop.eup %1448  ;;  %1472 = vtanh.f32 %v925_v52 }
 0x129   :  { %1404 = vmatpush3.xpose.msk.msra.mxu0 %vm100_vm0, %v1449_v25  ;;  %1474 = vtanh.f32 %v924_v21 }
 0x12a   :  { %1405 = vmatprep.subr.mxu0 %v1480_v11  ;;  %v1451_v0 = vpop.eup %1450  ;;  %1476 = vtanh.f32 %v923_v39 }
 0x12b   :  { %v1453_v32 = vpop.eup %1452  ;;  %1478 = vtanh.f32 %v922_v40 }
 0x12c   :  { %v1455_v53 = vpop.eup %1454 }
 0x12d   :  { %1406 = vmatpush3.xpose.msk.msra.mxu0 %vm100_vm0, %v1451_v0  ;;  %v1457_v33 = vpop.eup %1456 }
 0x12e   :  { %1407 = vmatprep.subr.mxu0 %v1480_v11  ;;  %v1459_v2 = vpop.eup %1458 }
 0x12f   :  { %v1461_v54 = vpop.eup %1460 }
 0x130   :  { %v1463_v37 = vpop.eup %1462 }
 0x131   :  { %1408 = vmatpush3.xpose.msk.msra.mxu0 %vm100_vm0, %v1453_v32  ;;  %v1465_v59 = vpop.eup %1464 }
 0x132   :  { %1409 = vmatprep.subr.mxu0 %v1480_v11  ;;  %v1467_v38 = vpop.eup %1466 }
 0x133   :  { %v1469_v4 = vpop.eup %1468 }
 0x134   :  { %v1471_v41 = vpop.eup %1470 }
 0x135   :  { %1410 = vmatpush3.xpose.msk.msra.mxu0 %vm100_vm0, %v1455_v53  ;;  %v1473_v13 = vpop.eup %1472 }
 0x136   :  { %1411 = vmatprep.subr.mxu0 %v1480_v11  ;;  %v1475_v12 = vpop.eup %1474 }
 0x137   :  { %v1477_v42 = vpop.eup %1476 }
 0x138   :  { %v1479_v16 = vpop.eup %1478 }
 0x139   :  { %1412 = vmatpush3.xpose.msk.msra.mxu0 %vm100_vm0, %v1457_v33 }
 0x13a   :  { %1413 = vmatprep.subr.mxu0 %v1480_v11 }
 0x13d   :  { %1414 = vmatpush3.xpose.msk.msra.mxu0 %vm100_vm0, %v1459_v2 }
 0x13e   :  { %1415 = vmatprep.subr.mxu0 %v1480_v11 }
 0x141   :  { %1416 = vmatpush3.xpose.msk.msra.mxu0 %vm100_vm0, %v1461_v54 }
 0x142   :  { %1417 = vmatprep.subr.mxu0 %v1480_v11 }
 0x145   :  { %1418 = vmatpush3.xpose.msk.msra.mxu0 %vm100_vm0, %v1463_v37 }
 0x146   :  { %1419 = vmatprep.subr.mxu0 %v1480_v11 }
 0x149   :  { %1420 = vmatpush3.xpose.msk.msra.mxu0 %vm100_vm0, %v1465_v59 }
 0x14a   :  { %1421 = vmatprep.subr.mxu0 %v1480_v11 }
 0x14d   :  { %1422 = vmatpush3.xpose.msk.msra.mxu0 %vm100_vm0, %v1467_v38 }
 0x14e   :  { %1423 = vmatprep.subr.mxu0 %v1480_v11 }
 0x151   :  { %1424 = vmatpush3.xpose.msk.msra.mxu0 %vm100_vm0, %v1469_v4 }
 0x152   :  { %1425 = vmatprep.subr.mxu0 %v1480_v11 }
 0x155   :  { %1426 = vmatpush3.xpose.msk.msra.mxu0 %vm100_vm0, %v1471_v41 }
 0x156   :  { %1427 = vmatprep.subr.mxu0 %v1480_v11 }
 0x159   :  { %1428 = vmatpush3.xpose.msk.msra.mxu0 %vm100_vm0, %v1473_v13 }
 0x15a   :  { %1429 = vmatprep.subr.mxu0 %v1480_v11 }
 0x15d   :  { %1430 = vmatpush3.xpose.msk.msra.mxu0 %vm100_vm0, %v1475_v12 }
 0x15e   :  { %1431 = vmatprep.subr.mxu0 %v1480_v11 }
 0x161   :  { %1432 = vmatpush3.xpose.msk.msra.mxu0 %vm100_vm0, %v1477_v42 }
 0x162   :  { %1433 = vmatprep.subr.mxu0 %v1480_v11 }
 0x165   :  { %1434 = vmatpush3.xpose.msk.msra.mxu0 %vm100_vm0, %v1479_v16 }
 0x168   :  { %1436 = vmatmul.mubr.msk.f32.vlgmr.msra.gmra.mxu0 %vm100_vm0, %v954_v43 }
 0x228   :  { %v1072_v45 = vpop.f32.mrf.mxu0 }
 0x229   :  { %v1078_v46 = vadd.f32 %v1077_v44, %v1072_v45 }
 0x22a   :  { %v1437_v47 = vpop.f32.mrf.mxu0 }
 0x22b   :  { %1079 = vst [vmem:[%s2000_s7] sm:$0x1] %v1078_v46 }

</bundles_post_ra>
